<compile_context>
chip_gen: v6e
topology: v6e:2x2x1
jax: 0.10.0
libtpu: 0.0.40
codegen_flags: <defaults>
</compile_context>

<pallas_src>
import functools

import jax
import jax.numpy as jnp
from jax import lax
from jax.experimental import pallas as pl
from jax.experimental.pallas import tpu as pltpu


def _wh_kernel(x_ref, w1_ref, w2_ref, coef_ref, o_ref, ypad_ref, *,
               K, L, pad, F, BB):
    """One batch-block of the Wiener–Hammerstein forward pass.

    x_ref:    (BB*F, L+2*pad)  VMEM  padded input, each batch row replicated F times
    w1_ref:   (BB*F, K)        VMEM  conv1 taps, tiled over the BB batch rows
    w2_ref:   (BB*F, K)        VMEM  conv2 taps, tiled over the BB batch rows
    coef_ref: (3,)             SMEM  (a0, a1, a2)
    o_ref:    (BB, 1, L)       VMEM  output block
    ypad_ref: (BB*F, L+2*pad)  VMEM  scratch: zero-padded nonlinearity output
    """
    a0 = coef_ref[0]
    a1 = coef_ref[1]
    a2 = coef_ref[2]
    BF = BB * F
    Lp = L + 2 * pad

    # conv1: K shifted broadcast-MACs over the whole (BB*F, L) tile (pure VPU;
    # PyTorch Conv1d is cross-correlation, no kernel flip).
    h = w1_ref[:, 0:1] * x_ref[:, 0:L]
    for k in range(1, K):
        h = h + w1_ref[:, k:k + 1] * x_ref[:, k:k + L]

    # Static memoryless nonlinearity, Horner form: a0*h + a1*h^2 + a2*h^3.
    y = h * (a0 + h * (a1 + a2 * h))

    # Stage y into a zero-padded scratch so conv2 can read shifted windows
    # without materializing concatenations.
    ypad_ref[:, 0:pad] = jnp.zeros((BF, pad), jnp.float32)
    ypad_ref[:, pad + L:Lp] = jnp.zeros((BF, pad), jnp.float32)
    ypad_ref[:, pad:pad + L] = y

    # conv2: K shifted broadcast-MACs, then one sublane reduce over the F filters.
    acc = w2_ref[:, 0:1] * ypad_ref[:, 0:L]
    for k in range(1, K):
        acc = acc + w2_ref[:, k:k + 1] * ypad_ref[:, k:k + L]
    out = jnp.sum(acc.reshape(BB, F, L), axis=1)               # (BB, L)
    o_ref[...] = out.reshape(BB, 1, L).astype(o_ref.dtype)


def wh_channel_net(x, w1, w2, coeffs, *, batch_block=None):
    """Pallas forward.  x: (B,1,L); w1: (F,1,K); w2: (1,F,K); coeffs: (3,)."""
    B, c_in, L = x.shape
    assert c_in == 1
    F_, _, K = w1.shape
    assert K % 2 == 1, "odd filter_length assumed (so output length == L)"
    pad = K // 2
    Lp = L + 2 * pad

    if batch_block is None:
        # One batch per grid step when the (batch_block*F) sublane block tiles by
        # 8 (so v7x's two TensorCores split the batch); otherwise fall back to the
        # whole batch in a single program.
        batch_block = 1 if (F_ % 8 == 0) else B
    bb = batch_block
    assert B % bb == 0 and (bb == B or (bb * F_) % 8 == 0)

    f32 = jnp.float32
    x_pad = jnp.pad(x.reshape(B, L).astype(f32), ((0, 0), (pad, pad)))   # (B, Lp)
    # Replicate each batch row F times so per-filter taps broadcast as a plain
    # (BB*F, 1) column inside the kernel (no in-kernel sublane gymnastics).
    x_rep = jnp.repeat(x_pad, F_, axis=0)                                # (B*F, Lp)
    w1b = jnp.tile(w1.reshape(F_, K).astype(f32), (bb, 1))               # (bb*F, K)
    w2b = jnp.tile(w2.reshape(F_, K).astype(f32), (bb, 1))               # (bb*F, K)
    coefs = coeffs.astype(f32)                                           # (3,)

    kernel = functools.partial(_wh_kernel, K=K, L=L, pad=pad, F=F_, BB=bb)
    out = pl.pallas_call(
        kernel,
        out_shape=jax.ShapeDtypeStruct((B, 1, L), f32),
        grid_spec=pltpu.PrefetchScalarGridSpec(
            num_scalar_prefetch=0,
            grid=(B // bb,),
            in_specs=[
                pl.BlockSpec((bb * F_, Lp), lambda i: (i, 0)),       # x (batch block)
                pl.BlockSpec((bb * F_, K), lambda i: (0, 0)),        # conv1 taps
                pl.BlockSpec((bb * F_, K), lambda i: (0, 0)),        # conv2 taps
                pl.BlockSpec(memory_space=pltpu.MemorySpace.SMEM),   # a0, a1, a2
            ],
            out_specs=pl.BlockSpec((bb, 1, L), lambda i: (i, 0, 0)),
            scratch_shapes=[pltpu.VMEM((bb * F_, Lp), f32)],
        ),
        compiler_params=pltpu.CompilerParams(
            dimension_semantics=("parallel",)),
    )(x_rep, w1b, w2b, coefs)
    return out.astype(x.dtype)


def wh_reference(x, w1, w2, coeffs):
    """Pure-JAX reference (matches PyTorch Conv1d = cross-correlation)."""
    K = w1.shape[-1]
    pad = K // 2
    dn = ('NCH', 'OIH', 'NCH')
    h = lax.conv_general_dilated(x, w1, (1,), [(pad, pad)], dimension_numbers=dn)
    y = coeffs[0] * h + coeffs[1] * h ** 2 + coeffs[2] * h ** 3
    return lax.conv_general_dilated(y, w2, (1,), [(pad, pad)], dimension_numbers=dn)


def _xavier_uniform(key, shape, fan_in, fan_out, dtype=jnp.float32):
    bound = (6.0 / (fan_in + fan_out)) ** 0.5
    return jax.random.uniform(key, shape, minval=-bound, maxval=bound, dtype=dtype)


if __name__ == "__main__":
    # Small, module-consistent shapes: batch=2, 1 input channel, L=128 samples.
    B, L = 2, 128
    filter_length, num_filters = 5, 8

    key = jax.random.PRNGKey(0)
    kx, k1, k2 = jax.random.split(key, 3)

    x = jax.random.normal(kx, (B, 1, L), dtype=jnp.float32)

    # Deterministic xavier_uniform init matching the torch weight shapes.
    # conv1.weight: (num_filters, 1, K); conv2.weight: (1, num_filters, K)
    K = filter_length
    w1 = _xavier_uniform(k1, (num_filters, 1, K),
                         fan_in=1 * K, fan_out=num_filters * K)
    w2 = _xavier_uniform(k2, (1, num_filters, K),
                         fan_in=num_filters * K, fan_out=1 * K)
    # Non-trivial nonlinear coefficients (defaults of (0,0,0) give zero output).
    coeffs = jnp.array([1.0, 0.1, 0.01], dtype=jnp.float32)

    out = wh_channel_net(x, w1, w2, coeffs)
    jax.block_until_ready(out)

    ref = wh_reference(x, w1, w2, coeffs)
    assert out.shape == (B, 1, L), out.shape
    assert jnp.allclose(out, ref, rtol=1e-4, atol=1e-5), \
        float(jnp.max(jnp.abs(out - ref)))

    print("KERNEL_OK")
</pallas_src>

<mosaic_0001>
module attributes {stable_mosaic.version = 11 : i64} {
  func.func @_wh_kernel(%arg0: i32, %arg1: memref<8x132xf32, #tpu.memory_space<vmem>>, %arg2: memref<8x5xf32, #tpu.memory_space<vmem>>, %arg3: memref<8x5xf32, #tpu.memory_space<vmem>>, %arg4: memref<3xf32, #tpu.memory_space<smem>>, %arg5: memref<1x1x128xf32, #tpu.memory_space<vmem>>, %arg6: memref<8x132xf32, #tpu.memory_space<vmem>>) attributes {dimension_semantics = [#tpu.dimension_semantics<parallel>], iteration_bounds = array<i64: 2>, scalar_prefetch = 0 : i64, scratch_operands = 1 : i64, tpu.core_type = #tpu.core_type<tc>, window_params = [{transform_indices = @transform_0, window_bounds = array<i64: 8, 132>}, {pipeline_mode = #tpu.pipeline_mode<synchronous>, transform_indices = @transform_1, window_bounds = array<i64: 8, 5>}, {pipeline_mode = #tpu.pipeline_mode<synchronous>, transform_indices = @transform_2, window_bounds = array<i64: 8, 5>}, {transform_indices = @transform_3, window_bounds = array<i64: 3>}, {transform_indices = @transform_4, window_bounds = array<i64: 1, 1, 128>}]} {
    %c0 = arith.constant 0 : index
    %0 = memref.load %arg4[%c0] : memref<3xf32, #tpu.memory_space<smem>>
    %c1 = arith.constant 1 : index
    %1 = memref.load %arg4[%c1] : memref<3xf32, #tpu.memory_space<smem>>
    %c2 = arith.constant 2 : index
    %2 = memref.load %arg4[%c2] : memref<3xf32, #tpu.memory_space<smem>>
    %c0_0 = arith.constant 0 : index
    %c0_1 = arith.constant 0 : index
    %3 = vector.load %arg2[%c0_0, %c0_1] : memref<8x5xf32, #tpu.memory_space<vmem>>, vector<8x1xf32>
    %c0_2 = arith.constant 0 : index
    %c0_3 = arith.constant 0 : index
    %4 = vector.load %arg1[%c0_2, %c0_3] : memref<8x132xf32, #tpu.memory_space<vmem>>, vector<8x128xf32>
    %5 = vector.broadcast %3 : vector<8x1xf32> to vector<8x128xf32>
    %6 = arith.mulf %5, %4 : vector<8x128xf32>
    %c0_4 = arith.constant 0 : index
    %c1_5 = arith.constant 1 : index
    %7 = vector.load %arg2[%c0_4, %c1_5] : memref<8x5xf32, #tpu.memory_space<vmem>>, vector<8x1xf32>
    %c0_6 = arith.constant 0 : index
    %c1_7 = arith.constant 1 : index
    %8 = vector.load %arg1[%c0_6, %c1_7] : memref<8x132xf32, #tpu.memory_space<vmem>>, vector<8x128xf32>
    %9 = vector.broadcast %7 : vector<8x1xf32> to vector<8x128xf32>
    %10 = arith.mulf %9, %8 : vector<8x128xf32>
    %11 = arith.addf %6, %10 : vector<8x128xf32>
    %c0_8 = arith.constant 0 : index
    %c2_9 = arith.constant 2 : index
    %12 = vector.load %arg2[%c0_8, %c2_9] : memref<8x5xf32, #tpu.memory_space<vmem>>, vector<8x1xf32>
    %c0_10 = arith.constant 0 : index
    %c2_11 = arith.constant 2 : index
    %13 = vector.load %arg1[%c0_10, %c2_11] : memref<8x132xf32, #tpu.memory_space<vmem>>, vector<8x128xf32>
    %14 = vector.broadcast %12 : vector<8x1xf32> to vector<8x128xf32>
    %15 = arith.mulf %14, %13 : vector<8x128xf32>
    %16 = arith.addf %11, %15 : vector<8x128xf32>
    %c0_12 = arith.constant 0 : index
    %c3 = arith.constant 3 : index
    %17 = vector.load %arg2[%c0_12, %c3] : memref<8x5xf32, #tpu.memory_space<vmem>>, vector<8x1xf32>
    %c0_13 = arith.constant 0 : index
    %c3_14 = arith.constant 3 : index
    %18 = vector.load %arg1[%c0_13, %c3_14] : memref<8x132xf32, #tpu.memory_space<vmem>>, vector<8x128xf32>
    %19 = vector.broadcast %17 : vector<8x1xf32> to vector<8x128xf32>
    %20 = arith.mulf %19, %18 : vector<8x128xf32>
    %21 = arith.addf %16, %20 : vector<8x128xf32>
    %c0_15 = arith.constant 0 : index
    %c4 = arith.constant 4 : index
    %22 = vector.load %arg2[%c0_15, %c4] : memref<8x5xf32, #tpu.memory_space<vmem>>, vector<8x1xf32>
    %c0_16 = arith.constant 0 : index
    %c4_17 = arith.constant 4 : index
    %23 = vector.load %arg1[%c0_16, %c4_17] : memref<8x132xf32, #tpu.memory_space<vmem>>, vector<8x128xf32>
    %24 = vector.broadcast %22 : vector<8x1xf32> to vector<8x128xf32>
    %25 = arith.mulf %24, %23 : vector<8x128xf32>
    %26 = arith.addf %21, %25 : vector<8x128xf32>
    %27 = vector.broadcast %2 : f32 to vector<8x128xf32>
    %28 = arith.mulf %27, %26 : vector<8x128xf32>
    %29 = vector.broadcast %1 : f32 to vector<8x128xf32>
    %30 = arith.addf %29, %28 : vector<8x128xf32>
    %31 = arith.mulf %26, %30 : vector<8x128xf32>
    %32 = vector.broadcast %0 : f32 to vector<8x128xf32>
    %33 = arith.addf %32, %31 : vector<8x128xf32>
    %34 = arith.mulf %26, %33 : vector<8x128xf32>
    %cst = arith.constant 0.000000e+00 : f32
    %35 = vector.broadcast %cst : f32 to vector<8x2xf32>
    %c0_18 = arith.constant 0 : index
    %c0_19 = arith.constant 0 : index
    %36 = vector.load %arg6[%c0_18, %c0_19] : memref<8x132xf32, #tpu.memory_space<vmem>>, vector<8x2xf32>
    tpu.vector_store %arg6[%c0_18, %c0_19], %35 {strides = array<i32>} : memref<8x132xf32, #tpu.memory_space<vmem>>, vector<8x2xf32>,
    %cst_20 = arith.constant 0.000000e+00 : f32
    %37 = vector.broadcast %cst_20 : f32 to vector<8x2xf32>
    %c0_21 = arith.constant 0 : index
    %c130 = arith.constant 130 : index
    %38 = vector.load %arg6[%c0_21, %c130] : memref<8x132xf32, #tpu.memory_space<vmem>>, vector<8x2xf32>
    tpu.vector_store %arg6[%c0_21, %c130], %37 {strides = array<i32>} : memref<8x132xf32, #tpu.memory_space<vmem>>, vector<8x2xf32>,
    %c0_22 = arith.constant 0 : index
    %c2_23 = arith.constant 2 : index
    %39 = vector.load %arg6[%c0_22, %c2_23] : memref<8x132xf32, #tpu.memory_space<vmem>>, vector<8x128xf32>
    tpu.vector_store %arg6[%c0_22, %c2_23], %34 {strides = array<i32>} : memref<8x132xf32, #tpu.memory_space<vmem>>, vector<8x128xf32>,
    %c0_24 = arith.constant 0 : index
    %c0_25 = arith.constant 0 : index
    %40 = vector.load %arg3[%c0_24, %c0_25] : memref<8x5xf32, #tpu.memory_space<vmem>>, vector<8x1xf32>
    %c0_26 = arith.constant 0 : index
    %c0_27 = arith.constant 0 : index
    %41 = vector.load %arg6[%c0_26, %c0_27] : memref<8x132xf32, #tpu.memory_space<vmem>>, vector<8x128xf32>
    %42 = vector.broadcast %40 : vector<8x1xf32> to vector<8x128xf32>
    %43 = arith.mulf %42, %41 : vector<8x128xf32>
    %c0_28 = arith.constant 0 : index
    %c1_29 = arith.constant 1 : index
    %44 = vector.load %arg3[%c0_28, %c1_29] : memref<8x5xf32, #tpu.memory_space<vmem>>, vector<8x1xf32>
    %c0_30 = arith.constant 0 : index
    %c1_31 = arith.constant 1 : index
    %45 = vector.load %arg6[%c0_30, %c1_31] : memref<8x132xf32, #tpu.memory_space<vmem>>, vector<8x128xf32>
    %46 = vector.broadcast %44 : vector<8x1xf32> to vector<8x128xf32>
    %47 = arith.mulf %46, %45 : vector<8x128xf32>
    %48 = arith.addf %43, %47 : vector<8x128xf32>
    %c0_32 = arith.constant 0 : index
    %c2_33 = arith.constant 2 : index
    %49 = vector.load %arg3[%c0_32, %c2_33] : memref<8x5xf32, #tpu.memory_space<vmem>>, vector<8x1xf32>
    %c0_34 = arith.constant 0 : index
    %c2_35 = arith.constant 2 : index
    %50 = vector.load %arg6[%c0_34, %c2_35] : memref<8x132xf32, #tpu.memory_space<vmem>>, vector<8x128xf32>
    %51 = vector.broadcast %49 : vector<8x1xf32> to vector<8x128xf32>
    %52 = arith.mulf %51, %50 : vector<8x128xf32>
    %53 = arith.addf %48, %52 : vector<8x128xf32>
    %c0_36 = arith.constant 0 : index
    %c3_37 = arith.constant 3 : index
    %54 = vector.load %arg3[%c0_36, %c3_37] : memref<8x5xf32, #tpu.memory_space<vmem>>, vector<8x1xf32>
    %c0_38 = arith.constant 0 : index
    %c3_39 = arith.constant 3 : index
    %55 = vector.load %arg6[%c0_38, %c3_39] : memref<8x132xf32, #tpu.memory_space<vmem>>, vector<8x128xf32>
    %56 = vector.broadcast %54 : vector<8x1xf32> to vector<8x128xf32>
    %57 = arith.mulf %56, %55 : vector<8x128xf32>
    %58 = arith.addf %53, %57 : vector<8x128xf32>
    %c0_40 = arith.constant 0 : index
    %c4_41 = arith.constant 4 : index
    %59 = vector.load %arg3[%c0_40, %c4_41] : memref<8x5xf32, #tpu.memory_space<vmem>>, vector<8x1xf32>
    %c0_42 = arith.constant 0 : index
    %c4_43 = arith.constant 4 : index
    %60 = vector.load %arg6[%c0_42, %c4_43] : memref<8x132xf32, #tpu.memory_space<vmem>>, vector<8x128xf32>
    %61 = vector.broadcast %59 : vector<8x1xf32> to vector<8x128xf32>
    %62 = arith.mulf %61, %60 : vector<8x128xf32>
    %63 = arith.addf %58, %62 : vector<8x128xf32>
    %64 = vector.shape_cast %63 : vector<8x128xf32> to vector<1x8x128xf32>
    %cst_44 = arith.constant dense<0.000000e+00> : vector<1x128xf32>
    %65 = vector.multi_reduction <add>, %64, %cst_44 [1] : vector<1x8x128xf32> to vector<1x128xf32>
    %66 = vector.shape_cast %65 : vector<1x128xf32> to vector<1x1x128xf32>
    %c0_45 = arith.constant 0 : index
    %c0_46 = arith.constant 0 : index
    %c0_47 = arith.constant 0 : index
    %67 = vector.load %arg5[%c0_45, %c0_46, %c0_47] : memref<1x1x128xf32, #tpu.memory_space<vmem>>, vector<1x1x128xf32>
    tpu.vector_store %arg5[%c0_45, %c0_46, %c0_47], %66 {strides = array<i32>} : memref<1x1x128xf32, #tpu.memory_space<vmem>>, vector<1x1x128xf32>,
    return
  }
  func.func @transform_0(%arg0: i32) -> (i32, i32) {
    %c0_i32 = arith.constant 0 : i32
    %c0_i32_0 = arith.constant 0 : i32
    return %arg0, %c0_i32 : i32, i32
  }
  func.func @transform_1(%arg0: i32) -> (i32, i32) {
    %c0_i32 = arith.constant 0 : i32
    %c0_i32_0 = arith.constant 0 : i32
    %c0_i32_1 = arith.constant 0 : i32
    return %c0_i32, %c0_i32_0 : i32, i32
  }
  func.func @transform_2(%arg0: i32) -> (i32, i32) {
    %c0_i32 = arith.constant 0 : i32
    %c0_i32_0 = arith.constant 0 : i32
    %c0_i32_1 = arith.constant 0 : i32
    return %c0_i32, %c0_i32_0 : i32, i32
  }
  func.func @transform_3(%arg0: i32) -> i32 {
    %c0_i32 = arith.constant 0 : i32
    %c0_i32_0 = arith.constant 0 : i32
    return %c0_i32 : i32
  }
  func.func @transform_4(%arg0: i32) -> (i32, i32, i32) {
    %c0_i32 = arith.constant 0 : i32
    %c0_i32_0 = arith.constant 0 : i32
    %c0_i32_1 = arith.constant 0 : i32
    return %arg0, %c0_i32, %c0_i32_0 : i32, i32, i32
  }
}

</mosaic_0001>

<bundles_post_ra>
// kernel: tpu_custom_call.1
= control target key start
LH: loop header
LB: loop body
LE: loop exit
PB: predicated region body
PF: predicated region fallthrough
CT: control target
= control target key end

     0   :  { %9 = vsyncpa [#allocation4], 0  ;;  %s1075_s0 = inlined_call_operand.hbm [shape: f32[16,132], index: 0, kind: input, shape index: {}]   ;;  %s1076_s1 = inlined_call_operand.hbm [shape: f32[8,5], index: 1, kind: input, shape index: {}]   ;;  %s1077_s2 = inlined_call_operand.hbm [shape: f32[8,5], index: 2, kind: input, shape index: {}]   ;;  %s1078_s3 = inlined_call_operand.vmem [shape: f32[3], index: 3, kind: input, shape index: {}]   ;;  %s1079_s4 = inlined_call_operand.hbm [shape: f32[2,1,128], index: 4, kind: output, shape index: {}]  }
   0x1   :  { %11 = vsyncpa [#allocation4 + $0x1], 0 }
   0x2   :  { %12 = vsyncpa [#allocation8], 0 }
   0x3   :  { %13 = vsyncpa [#allocation6], 0 }
   0x4   :  { %14 = vsyncpa [#allocation5], 0 }
   0x5   :  { %16 = vsyncpa [#allocation5 + $0x1], 0  ;;  %s862_s15 = smov 0   ;;  %s864_s16 = smov 0  }
   0x6   :  { %s866_s17 = smov 0   ;;  %s868_s18 = smov 0  }
   0x7 LB: > { %s883_s19 = sadd.s32 4294967295, %s819_s18   ;;  %s535_s20 = sadd.s32 4294967294, %s819_s18   ;;  %s819_s18 = sphi %s868_s18, %s1103_s18   ;;  %s815_s17 = sphi %s866_s17, %s1102_s17   ;;  %s811_s16 = sphi %s864_s16, %s1101_s16   ;;  %s807_s15 = sphi %s862_s15, %s1100_s15  }
   0x8   : > { %p42_p0 = scmp.ne.s32.totalorder %s811_s16, %s807_s15  ;;  %p1080_p1 = scmp.eq.s32.totalorder %s883_s19, 0 }
   0x9   : > { %p135_p3 = scmp.eq.s32.totalorder %s535_s20, 1  ;;  %p536_p5 = scmp.ge.s32.totalorder %s819_s18, 1 }
   0xa   : > { %p892_p4 = por %p1080_p1, %p42_p0  ;;  %p142_p7 = scmp.lt.s32.totalorder %s819_s18, 3 }
   0xb   : > { %p897_p6 = por %p135_p3, %p42_p0  ;;  %s821_s24 = smov [#allocation7]  }
   0xc   : > { %s1084_s21 = scalar_select %p892_p4, 1, 0 }
   0xd   : > { %s1085_s22 = scalar_select %p897_p6, 1, 0 }
   0xe   : > { %p902_p8 = pnand %p536_p5, %p142_p7  ;;  %s155_s25 = sshll.u32 %s821_s24, 4  ;;  %s156_s25 = int_to_ptr.vmem [resolvable:$true] %s155_s25 }
   0xf   : > { %s822_s26 = smov [#allocation9]   ;;  %s177_s30 = sshll.u32 %s1078_s3, 4  ;;  %s918_s30 = int_to_ptr.vmem [resolvable:$true] %s177_s30 }
  0x10   : > { %s1086_s23 = scalar_select %p902_p8, 1, 0 }
  0x11   : > { %p571_p10 = pneg %p902_p8  ;;  %s166_s27 = sshll.u32 %s822_s26, 4  ;;  %s167_s27 = int_to_ptr.vmem [resolvable:$true] %s166_s27 }
  0x12   : > { %s663_s6 = scalar_lea.vmem %s156_s25, 128  ;;  %p671_p5 = scmp.lt.s32.totalorder %s156_s25, %s156_s25 }
  0x13   : > { %p914_p11 = pnand %p571_p10, %p1080_p1  ;;  %p664_p13 = scmp.ne.s32.totalorder %s156_s25, %s663_s6 }
  0x14   : > { %p672_p7 = scmp.lt.s32.totalorder %s663_s6, %s663_s6 }
  0x15   : > { %p654_p12 = pneg %p914_p11 }
  0x16   : > { %p673_p9 = por %p672_p7, %p671_p5 }
  0x17   : > { %p666_p0 = pnand %p664_p13, %p654_p12 }
  0x19   : > { %p667_p3 = pneg %p666_p0 }
  0x1b   : > { %p674_p10 = pnand %p673_p9, %p667_p3 }
  0x1d   : > { %677 = shalt.err (!%p674_p10)
}
  0x1e   : > { %574 = dma.hbm_to_vmem [thread:$0]  (!%p914_p11), %s1076_s1, 128, %s156_s25, [#allocation8]  }
  0x1f   : > { %s689_s9 = scalar_lea.vmem %s167_s27, 128  ;;  %p697_p13 = scmp.lt.s32.totalorder %s167_s27, %s167_s27 }
  0x20   : > { %p690_p1 = scmp.ne.s32.totalorder %s167_s27, %s689_s9  ;;  %p698_p0 = scmp.lt.s32.totalorder %s689_s9, %s689_s9 }
  0x22   : > { %p692_p2 = pnand %p690_p1, %p654_p12  ;;  %p699_p4 = por %p698_p0, %p697_p13 }
  0x24   : > { %p693_p6 = pneg %p692_p2 }
  0x26   : > { %p700_p8 = pnand %p699_p4, %p693_p6 }
  0x28   : > { %703 = shalt.err (!%p700_p8)
}
  0x29   : > { %577 = dma.hbm_to_vmem [thread:$0]  (!%p914_p11), %s1077_s2, 128, %s167_s27, [#allocation8]  }
  0x2a   : > { %s704_s12 = scalar_lea.vmem %s918_s30, 16  ;;  %p712_p3 = scmp.lt.s32.totalorder %s918_s30, %s918_s30 }
  0x2b   : > { %p705_p9 = scmp.ne.s32.totalorder %s918_s30, %s704_s12  ;;  %p713_p4 = scmp.lt.s32.totalorder %s704_s12, %s704_s12 }
  0x2d   : > { %p707_p1 = pnand %p705_p9, %p654_p12  ;;  %p714_p6 = por %p713_p4, %p712_p3 }
  0x2f   : > { %p708_p2 = pneg %p707_p1 }
  0x31   : > { %p715_p8 = pnand %p714_p6, %p708_p2 }
  0x33   : > { %718 = shalt.err (!%p715_p8)
}
  0x34   : > { %s823_s13 = smov [#allocation10]   ;;  %s949_s14 = sadd.s32 1, %s819_s18  }
  0x35   : > { %580 = dma.vmem_to_smem (!%p914_p11), %s918_s30, 16, %s823_s13, [#allocation6]  }
  0x36   : > { %s26_s20 = ssub.s32 %s819_s18, %s949_s14  ;;  %s29_s24 = sadd.s32 1, %s815_s17 }
  0x37   : > { %p27_p12 = scmp.eq.s32.totalorder %s26_s20, 0  ;;  %p36_p5 = scmp.ne.s32.totalorder %s815_s17, %s811_s16 }
  0x38   : > { %p37_p7 = scmp.eq.s32.totalorder %s819_s18, 0  ;;  %p592_p10 = scmp.lt.s32.totalorder %s819_s18, 2 }
  0x39   : > { %s959_s25 = scalar_select %p27_p12, %s815_s17, %s29_s24  }
  0x3a   : > { %p38_p13 = por %p37_p7, %p36_p5  ;;  %p1088_p0 = scmp.eq.s32.totalorder %s883_s19, 1 }
  0x3b   : > { %s188_s27 = sand.u32 1, %s815_s17   ;;  %s554_s28 = sshll.u32 %s819_s18, 8 }
  0x3c   : > { %p963_p9 = por %p1088_p0, %p36_p5  ;;  %s541_s29 = sshll.u32 %s188_s27, 4 }
  0x3d   : > { %s972_s6 = scalar_lea.hbm %s1075_s0, %s554_s28  ;;  %s192_s7 = scalar_lea.vmem [#allocation3], %s541_s29 }
  0x3e   : > { %s1089_s26 = scalar_select %p963_p9, 1, 0 }
  0x3f   : > { %s200_s8 = sshll.u32 %s192_s7, 4  ;;  %p974_p11 = pnand %p592_p10, %p38_p13  ;;  %s201_s8 = int_to_ptr.vmem [resolvable:$true] %s200_s8 }
  0x40   : > { %s189_s10 = scalar_lea.sflag [#allocation4], %s188_s27  ;;  %s719_s11 = scalar_lea.hbm %s972_s6, 256 }
  0x41   : > { %p720_p1 = scmp.ne.s32.totalorder %s972_s6, %s719_s11  ;;  %p721_p2 = pneg %p974_p11 }
  0x42   : > { %s724_s20 = scalar_lea.hbm %s1075_s0, 512  ;;  %p725_p6 = scmp.lt.s32.totalorder %s972_s6, %s1075_s0 }
  0x43   : > { %p722_p3 = pnand %p721_p2, %p720_p1  ;;  %p726_p8 = scmp.lt.s32.totalorder %s724_s20, %s719_s11 }
  0x45   : > { %p723_p4 = pneg %p722_p3  ;;  %p727_p12 = por %p726_p8, %p725_p6 }
  0x47   : > { %p728_p5 = pnand %p727_p12, %p723_p4 }
  0x49   : > { %731 = shalt.err (!%p728_p5)
}
  0x4a   : > { %s732_s29 = scalar_lea.vmem %s201_s8, 256  ;;  %s824_s27 = smov [#allocation3]  }
  0x4b   : > { %p733_p7 = scmp.ne.s32.totalorder %s201_s8, %s732_s29  ;;  %s737_s30 = sshll.u32 %s824_s27, 4  ;;  %s738_s30 = int_to_ptr.vmem [resolvable:$false] %s737_s30 }
  0x4c   : > { %s739_s5 = scalar_lea.vmem %s738_s30, 512  ;;  %p740_p0 = scmp.lt.s32.totalorder %s201_s8, %s738_s30 }
  0x4d   : > { %p735_p10 = pnand %p733_p7, %p721_p2  ;;  %p741_p1 = scmp.lt.s32.totalorder %s739_s5, %s732_s29 }
  0x4f   : > { %p736_p13 = pneg %p735_p10  ;;  %p742_p3 = por %p741_p1, %p740_p0 }
  0x51   : > { %p743_p9 = pnand %p742_p3, %p736_p13 }
  0x53   : > { %746 = shalt.err (!%p743_p9)
}
  0x54   : > { %584 = dma.hbm_to_vmem [thread:$0]  (!%p974_p11), %s972_s6, 256, %s201_s8, %s189_s10  }
  0x55   : > { %p1091_p4 = scmp.ne.s32.totalorder %s1086_s23, 0 }
  0x56   : > { %s995_s7 = sand.u32 (!%p1091_p4), 1, %s811_s16   ;;  %p1092_p2 = scmp.ne.s32.totalorder (!%p1091_p4), %s1084_s21, 0 }
  0x57   : > { %209 = sbr.rel (%p1091_p4) target bundleno = 652 (0x28c), region = 36  ;;  %s545_s11 = sshll.u32 (!%p1091_p4), %s995_s7, 4 }
  0x58   : > { %s212_s12 = scalar_lea.sflag (!%p1091_p4), [#allocation4], %s995_s7  ;;  %s215_s13 = scalar_lea.vmem (!%p1091_p4), [#allocation3], %s545_s11 }
  0x5c   : > { %790 = dma.done.wait (%p1092_p2), %s212_s12, 256  }
  0x5d   : > { %792 = vsyncadd (%p1092_p2), %s212_s12, 4294967040  ;;  %p1093_p9 = scmp.eq.s32.totalorder %s883_s19, 0 }
  0x5f   : > { %794 = dma.done.wait (%p1093_p9), [#allocation8], 256   ;;  %p1094_p11 = pmov %p1093_p9 }
  0x60   : > { %p1095_p6 = pmov %p1093_p9 }
  0x61   : > { %796 = vsyncadd (%p1094_p11), [#allocation8], 4294967040 }
  0x62   : > { %798 = dma.done.wait (%p1095_p6), [#allocation6], 16   ;;  %p1096_p8 = pmov %p1095_p6 }
  0x64   : > { %800 = vsyncadd (%p1096_p8), [#allocation6], 4294967280 }
  0x65   : > { %232 = sfence }
  0x66   : > { %v255_v0 = vld [vmem:[#allocation7] sm:$0xff]  ;;  %v825_v1 = vmov 1   ;;  %v826_v2 = vmov 3   ;;  %v827_v3 = vmov 2   ;;  %v828_v4 = vmov 4   ;;  %v264_v7 = vld [vmem:[%s215_s13 + $0x8] sm:$0xff] }
  0x67   : > { %643 = vset.pattern.permute.xlu0 %v825_v1  ;;  %645 = vset.pattern.permute.xlu1 %v826_v2  ;;  %v829_v5 = vmov 0   ;;  %v263_v6 = vld [vmem:[%s215_s13] sm:$0xff]  ;;  %s830_s21 = smov 127   ;;  %s831_s23 = smov 126   ;;  %v348_v20 = vld [vmem:[#allocation9] sm:$0xff]  ;;  %vm337_vm0 = vcmask 15360  }
  0x68   : > { %266 = vperm.xlu0 %643, %v255_v0   ;;  %298 = vperm.xlu1 %645, %v255_v0   ;;  %s832_s6 = smov 125   ;;  %s833_s8 = smov 124   ;;  %vm339_vm1 = vcmask 31760   ;;  %v834_v21 = vmov 0.0   ;;  %vm277_vm2 = vcmask 1039360   ;;  %vm293_vm3 = vcmask 1031168  }
  0x69   : > { %338 = vst.msk [vmem:[#allocation2] sm:$0xff] %vm337_vm0, %v834_v21  ;;  %s550_s9 = sld [smem:[#allocation10 + $0x2]]  ;;  %vm309_vm4 = vcmask 1022976   ;;  %vm325_vm5 = vcmask 1014784   ;;  %s835_s24 = smov 2   ;;  %vm345_vm6 = vcmask 1047568  }
  0x6a   : > { %340 = vst.msk [vmem:[#allocation2 + $0x8] sm:$0xff] %vm339_vm1, %v834_v21  ;;  %s549_s10 = sld [smem:[#allocation10 + $0x1]]  ;;  %s551_s28 = sshll.u32 %s883_s19, 4 }
  0x6b   : > { %s252_s20 = sld [smem:[#allocation10]]  ;;  %s251_s29 = scalar_lea.vmem [#allocation11], %s995_s7 }
  0x6c   : > { %644 = vset.pattern.permute.xlu0 %v827_v3  ;;  %646 = vset.pattern.permute.xlu1 %v828_v4  ;;  %s438_s27 = sshll.u32 %s251_s29, 4  ;;  %s436_s11 = scalar_lea.hbm %s1079_s4, %s551_s28  ;;  %s439_s27 = int_to_ptr.vmem [resolvable:$true] %s438_s27 }
  0x6d   : > { %282 = vperm.xlu0 %644, %v255_v0   ;;  %314 = vperm.xlu1 %646, %v255_v0   ;;  %s426_s12 = scalar_lea.sflag [#allocation5], %s995_s7  ;;  %s747_s13 = scalar_lea.vmem %s439_s27, 16 }
  0x6e   : > { %p748_p12 = scmp.ne.s32.totalorder %s439_s27, %s747_s13  ;;  %p1097_p5 = scmp.ne.s32.totalorder %s1089_s26, 0 }
  0x6f   : > { %v329_v39 = vstv %s550_s9 }
  0x70   : > { %v331_v41 = vstv %s549_s10  ;;  %p749_p7 = pnand %p748_p12, %p1097_p5 }
  0x71   : > { %647 = vset.pattern.permute.xlu1 %v829_v5  ;;  %v334_v44 = vstv %s252_s20 }
  0x72   : > { %259 = vperm.xlu1 %647, %v255_v0   ;;  %p750_p10 = pneg %p749_p7 }
  0x76   : > { %648 = vset.pattern.permute.xlu1 %v825_v1 }
  0xe3   : > { %v267_v8 = vpop.permute.xlu0 %266  ;;  %v299_v11 = vpop.permute.xlu1 %298 }
  0xe4   : > { %v269_v9 = vmul.f32 %v267_v8, %v263_v6  ;;  %v270_v10 = vmul.f32 %v267_v8, %v264_v7  ;;  %v301_v15 = vmul.f32 %v299_v11, %v263_v6  ;;  %v302_v16 = vmul.f32 %v299_v11, %v264_v7 }
  0xe6   : > { %275 = vrot.lane.b32.xlu1 %v270_v10, %s830_s21  ;;  %273 = vrot.lane.b32.xlu0 %v269_v9, %s830_s21 }
  0xe8   : > { %v283_v12 = vpop.permute.xlu0 %282  ;;  %v315_v17 = vpop.permute.xlu1 %314 }
  0xe9   : > { %v285_v13 = vmul.f32 %v283_v12, %v263_v6  ;;  %v286_v14 = vmul.f32 %v283_v12, %v264_v7  ;;  %v317_v18 = vmul.f32 %v315_v17, %v263_v6  ;;  %v318_v19 = vmul.f32 %v315_v17, %v264_v7 }
  0xeb   : > { %291 = vrot.lane.b32.xlu1 %v286_v14, %s831_s23  ;;  %289 = vrot.lane.b32.xlu0 %v285_v13, %s831_s23 }
  0xed   : > { %v260_v22 = vpop.permute.xlu1 %259 }
  0xee   : > { %v262_v28 = vmul.f32 %v263_v6, %v260_v22 }
  0xef   : > { %307 = vrot.lane.b32.xlu1 %v302_v16, %s832_s6  ;;  %305 = vrot.lane.b32.xlu0 %v301_v15, %s832_s6 }
  0xf3   : > { %323 = vrot.lane.b32.xlu1 %v318_v19, %s833_s8  ;;  %321 = vrot.lane.b32.xlu0 %v317_v18, %s833_s8 }
  0xf7   : > { %359 = vperm.xlu1 %648, %v348_v20  }
  0xfb   : > { %649 = vset.pattern.permute.xlu1 %v826_v2 }
  0xfc   : > { %389 = vperm.xlu1 %649, %v348_v20  }
 0x100   : > { %651 = vset.pattern.permute.xlu1 %v829_v5 }
 0x101   : > { %352 = vperm.xlu1 %651, %v348_v20  }
 0x158   : > { %v276_v23 = vpop.permute.xlu1 %275  ;;  %v274_v24 = vpop.permute.xlu0 %273 }
 0x159   : > { %v278_v27 = vsel %vm277_vm2, %v274_v24, %v276_v23 }
 0x15a   : > { %v280_v30 = vadd.f32 %v278_v27, %v262_v28 }
 0x15d   : > { %v292_v25 = vpop.permute.xlu1 %291  ;;  %v290_v26 = vpop.permute.xlu0 %289 }
 0x15e   : > { %v294_v29 = vsel %vm293_vm3, %v290_v26, %v292_v25 }
 0x15f   : > { %v296_v34 = vadd.f32 %v294_v29, %v280_v30 }
 0x161   : > { %v308_v31 = vpop.permute.xlu1 %307  ;;  %v306_v32 = vpop.permute.xlu0 %305 }
 0x162   : > { %v310_v33 = vsel %vm309_vm4, %v306_v32, %v308_v31 }
 0x163   : > { %v312_v35 = vadd.f32 %v310_v33, %v296_v34 }
 0x165   : > { %v324_v36 = vpop.permute.xlu1 %323  ;;  %v322_v37 = vpop.permute.xlu0 %321 }
 0x166   : > { %v326_v38 = vsel %vm325_vm5, %v322_v37, %v324_v36 }
 0x167   : > { %v328_v40 = vadd.f32 %v326_v38, %v312_v35 }
 0x169   : > { %v330_v42 = vmul.f32 %v329_v39, %v328_v40 }
 0x16b   : > { %v332_v43 = vadd.f32 %v331_v41, %v330_v42 }
 0x16d   : > { %v333_v45 = vmul.f32 %v332_v43, %v328_v40 }
 0x16f   : > { %v335_v46 = vadd.f32 %v334_v44, %v333_v45 }
 0x171   : > { %v336_v47 = vmul.f32 %v335_v46, %v328_v40 }
 0x172   : > { %v360_v49 = vpop.permute.xlu1 %359 }
 0x173   : > { %342 = vrot.lane.b32.xlu0 %v336_v47, %s835_s24 }
 0x177   : > { %374 = vperm.xlu0 %644, %v348_v20   ;;  %v390_v57 = vpop.permute.xlu1 %389 }
 0x17b   : > { %650 = vset.pattern.permute.xlu0 %v828_v4 }
 0x17c   : > { %404 = vperm.xlu0 %650, %v348_v20   ;;  %v353_v63 = vpop.permute.xlu1 %352 }
 0x1e5   : > { %v343_v48 = vpop.permute.xlu0 %342 }
 0x1e6   : > { %346 = vst.msk [vmem:[#allocation2] sm:$0xff] %vm345_vm6, %v343_v48 }
 0x1e7   : > { %347 = vst.msk [vmem:[#allocation2 + $0x8] sm:$0xff] %vm337_vm0, %v343_v48 }
 0x1ed   : > { %v356_v50 = vld [vmem:[#allocation2] sm:$0xff] }
 0x1ee   : > { %v357_v51 = vld [vmem:[#allocation2 + $0x8] sm:$0xff]  ;;  %v362_v53 = vmul.f32 %v360_v49, %v356_v50  ;;  %v392_v58 = vmul.f32 %v390_v57, %v356_v50  ;;  %v355_v5 = vmul.f32 %v356_v50, %v353_v63 }
 0x1ef   : > { %v363_v52 = vmul.f32 %v360_v49, %v357_v51  ;;  %v393_v59 = vmul.f32 %v390_v57, %v357_v51 }
 0x1f0   : > { %366 = vrot.lane.b32.xlu1 %v362_v53, %s830_s21 }
 0x1f1   : > { %368 = vrot.lane.b32.xlu0 %v363_v52, %s830_s21  ;;  %s836_s21 = smov [#allocation11]  }
 0x1f2   : > { %v375_v54 = vpop.permute.xlu0 %374 }
 0x1f3   : > { %v377_v55 = vmul.f32 %v375_v54, %v356_v50  ;;  %v378_v56 = vmul.f32 %v375_v54, %v357_v51 }
 0x1f5   : > { %383 = vrot.lane.b32.xlu0 %v378_v56, %s831_s23  ;;  %381 = vrot.lane.b32.xlu1 %v377_v55, %s831_s23  ;;  %s751_s23 = sshll.u32 %s836_s21, 4  ;;  %s752_s23 = int_to_ptr.vmem [resolvable:$false] %s751_s23 }
 0x1f6   : > { %s753_s19 = scalar_lea.vmem %s752_s23, 32  ;;  %p754_p13 = scmp.lt.s32.totalorder %s439_s27, %s752_s23 }
 0x1f7   : > { %v405_v60 = vpop.permute.xlu0 %404  ;;  %p755_p0 = scmp.lt.s32.totalorder %s753_s19, %s747_s13 }
 0x1f8   : > { %v407_v61 = vmul.f32 %v405_v60, %v356_v50  ;;  %v408_v62 = vmul.f32 %v405_v60, %v357_v51 }
 0x1f9   : > { %398 = vrot.lane.b32.xlu0 %v393_v59, %s832_s6  ;;  %396 = vrot.lane.b32.xlu1 %v392_v58, %s832_s6  ;;  %p756_p1 = por %p755_p0, %p754_p13 }
 0x1fb   : > { %p757_p3 = pnand %p756_p1, %p750_p10 }
 0x1fd   : > { %413 = vrot.lane.b32.xlu0 %v408_v62, %s833_s8  ;;  %411 = vrot.lane.b32.xlu1 %v407_v61, %s833_s8 }
 0x262   : > { %v367_v1 = vpop.permute.xlu1 %366 }
 0x263   : > { %v369_v0 = vpop.permute.xlu0 %368 }
 0x264   : > { %v370_v4 = vsel %vm277_vm2, %v367_v1, %v369_v0 }
 0x265   : > { %v372_v7 = vadd.f32 %v370_v4, %v355_v5 }
 0x267   : > { %v382_v2 = vpop.permute.xlu1 %381  ;;  %v384_v3 = vpop.permute.xlu0 %383 }
 0x268   : > { %v385_v6 = vsel %vm293_vm3, %v382_v2, %v384_v3 }
 0x269   : > { %v387_v11 = vadd.f32 %v385_v6, %v372_v7 }
 0x26b   : > { %v397_v8 = vpop.permute.xlu1 %396  ;;  %v399_v9 = vpop.permute.xlu0 %398 }
 0x26c   : > { %v400_v10 = vsel %vm309_vm4, %v397_v8, %v399_v9 }
 0x26d   : > { %v402_v12 = vadd.f32 %v400_v10, %v387_v11 }
 0x26f   : > { %v412_v13 = vpop.permute.xlu1 %411  ;;  %v414_v14 = vpop.permute.xlu0 %413 }
 0x270   : > { %v415_v15 = vsel %vm325_vm5, %v412_v13, %v414_v14 }
 0x271   : > { %v417_v16 = vadd.f32 %v415_v15, %v402_v12 }
 0x273   : > { %v418_v17 = vrot.slane %v417_v16, 4 }
 0x275   : > { %v419_v18 = vadd.f32 %v418_v17, %v417_v16 }
 0x277   : > { %v420_v19 = vrot.slane %v419_v18, 2 }
 0x279   : > { %v421_v20 = vadd.f32 %v420_v19, %v419_v18 }
 0x27b   : > { %v422_v21 = vrot.slane %v421_v20, 1 }
 0x27d   : > { %v423_v22 = vadd.f32 %v422_v21, %v421_v20 }
 0x27f   : > { %424 = vst [vmem:[%s251_s29] sm:$0x1] %v423_v22 }
 0x280   : > { %760 = shalt.err (!%p757_p3)
}
 0x281   : > { %s761_s6 = scalar_lea.hbm %s436_s11, 16  ;;  %s765_s9 = scalar_lea.hbm %s1079_s4, 32 }
 0x282   : > { %p762_p4 = scmp.ne.s32.totalorder %s436_s11, %s761_s6  ;;  %p766_p11 = scmp.lt.s32.totalorder %s436_s11, %s1079_s4 }
 0x283   : > { %p767_p6 = scmp.lt.s32.totalorder %s765_s9, %s761_s6 }
 0x284   : > { %p763_p2 = pnand %p762_p4, %p1097_p5 }
 0x285   : > { %p768_p8 = por %p767_p6, %p766_p11 }
 0x286   : > { %p764_p9 = pneg %p763_p2 }
 0x288   : > { %p769_p12 = pnand %p768_p8, %p764_p9 }
 0x28a   : > { %772 = shalt.err (!%p769_p12)
}
 0x28b   : > { %569 = dma.vmem_to_hbm [thread:$0]  (%p1097_p5), %s439_s27, 16, %s436_s11, %s426_s12  }
 0x28c PF: > { %s450_s24 = sand.u32 1, %s807_s15   ;;  %p1098_p7 = scmp.ne.s32.totalorder %s1085_s22, 0 }
 0x28d   : > { %p1099_p10 = scmp.ge.s32.totalorder %s819_s18, 2  ;;  %s451_s28 = scalar_lea.sflag [#allocation5], %s450_s24 }
 0x28f   : > { %p586_p13 = pnand %p1099_p10, %p1098_p7 }
 0x291   : > { %p587_p0 = pneg %p586_p13 }
 0x293   : > { %802 = dma.done.wait (%p587_p0), %s451_s28, 16  }
 0x294   : > { %804 = vsyncadd (%p587_p0), %s451_s28, 4294967280  ;;  %p19_p1 = scmp.ge.s32.totalorder %s949_s14, 4   ;;  %s1100_s15 = smov %s811_s16 }
 0x295   : > { %s1101_s16 = smov %s815_s17  ;;  %s1102_s17 = smov %s959_s25 }
 0x296   : > { %s1103_s18 = smov %s949_s14  ;;  %21 = sbr.rel (!%p19_p1) target bundleno = 7 (0x7), region = 94 }
 0x29b   :  { %455 = vsyncpa [#allocation4], 1 }
 0x29c   :  { %457 = vsyncpa [#allocation4 + $0x1], 1 }
 0x29d   :  { %458 = vsyncpa [#allocation8], 1 }
 0x29e   :  { %459 = vsyncpa [#allocation5], 1 }
 0x29f   :  { %461 = vsyncpa [#allocation5 + $0x1], 1 }
 0x2a0   :  { %462 = vsyncpa [#allocation6], 1 }
 0x2a1   :  { %464 = vsyncpa [#allocation6 + $0x1], 1 }

</bundles_post_ra>
